<compile_context>
chip_gen: v7x
topology: tpu7x:2x2x1
jax: 0.10.0
libtpu: 0.0.40
codegen_flags: <defaults>
</compile_context>

<pallas_src>
import jax
import jax.numpy as jnp
from jax.experimental import pallas as pl
from jax.experimental.pallas import tpu as pltpu


def _round_up(x, m):
    return (x + m - 1) // m * m


def _scatter_scores_kernel(flags_ref, labels_ref, scores_ref, out_ref):
    """Scatter per-detection scores into one (block_b, block_m) output tile.

    out[b, labels[b, k]] = scores[b, k]  (ascending k -> duplicates: last wins,
                                          matching torch index assignment)
    labels == -1 never matches a column -> skipped (unknown MID).
    Padded MID columns (>= num_mids) are never matched -> stay 0.
    Tiles flagged as having no matching detection skip the compare/select
    chain entirely and just store zeros.
    """
    tb, K = labels_ref.shape
    tm = out_ref.shape[1]
    i = pl.program_id(0)
    j = pl.program_id(1)
    nj = pl.num_programs(1)

    flag = flags_ref[i * nj + j]          # scalar read from SMEM

    @pl.when(flag == 0)
    def _():
        out_ref[...] = jnp.zeros_like(out_ref)

    @pl.when(flag != 0)
    def _():
        # Shift labels into tile-local coordinates on the tiny (tb, K) block;
        # the big (tb, tm) iota then needs no per-step offset add.
        labels_local = labels_ref[...] - j * tm          # (tb, K) int32
        scores = scores_ref[...]                         # (tb, K) float32
        col = jax.lax.broadcasted_iota(jnp.int32, (tb, tm), 1)

        # Zero-init folded into the k == 0 select, then an unrolled
        # compare/select chain (K small & static), ascending k preserves
        # last-write-wins.
        acc = jnp.where(col == labels_local[:, 0:1], scores[:, 0:1],
                        jnp.float32(0.0))
        for k in range(1, K):
            acc = jnp.where(col == labels_local[:, k:k + 1],
                            scores[:, k:k + 1], acc)

        out_ref[...] = acc.astype(out_ref.dtype)


def gcloud_vision_scores(labels, scores, num_mids, *,
                         block_b=None, block_m=None,
                         out_dtype=jnp.float32):
    """Pallas equivalent of torch.stack([result_to_row(r) for r in responses]).

    labels: (B, K) int32  — index into mids, or -1 for unknown MID (skipped)
    scores: (B, K) float32
    returns (B, num_mids) out_dtype

    Note: for bf16 output (v5e write-roofline win), pass out_dtype=jnp.bfloat16
    and a block_b that is a multiple of 16 (bf16 (16,128) tiling).
    """
    B, K = labels.shape
    assert scores.shape == (B, K)

    # --- Lane-dense output tiling: num_mids padded to a multiple of 128. ---
    if block_m is None:
        block_m = min(2048, _round_up(num_mids, 128))
    block_m = max(128, _round_up(block_m, 128))
    M_pad = _round_up(num_mids, block_m)

    # --- Sublane-full batch tiling: B padded to a multiple of 8-row tiles. ---
    if block_b is None:
        block_b = min(256, _round_up(B, 8))
    block_b = max(8, _round_up(block_b, 8))
    B_pad = _round_up(B, block_b)

    # Pad inputs: padded rows get label = -1 (never matched) and score = 0.
    labels_p = jnp.pad(labels.astype(jnp.int32), ((0, B_pad - B), (0, 0)),
                       constant_values=-1)
    scores_p = jnp.pad(scores.astype(jnp.float32), ((0, B_pad - B), (0, 0)),
                       constant_values=0.0)

    grid_i = B_pad // block_b
    grid_j = M_pad // block_m

    # --- Per-tile "any detection lands here" flags (empty-tile skip). ------
    tile_of_label = jnp.where(labels_p >= 0, labels_p // block_m, -1)  # (B_pad, K)
    hit = tile_of_label[:, :, None] == jnp.arange(grid_j, dtype=jnp.int32)[None, None, :]
    flags = hit.any(axis=1)                                   # (B_pad, grid_j)
    flags = flags.reshape(grid_i, block_b, grid_j).any(axis=1)  # (grid_i, grid_j)
    flags = flags.reshape(-1).astype(jnp.int32)                # (grid_i*grid_j,)

    grid_spec = pltpu.PrefetchScalarGridSpec(
        num_scalar_prefetch=1,
        grid=(grid_i, grid_j),
        in_specs=[
            pl.BlockSpec((block_b, K), lambda i, j, flags: (i, 0)),
            pl.BlockSpec((block_b, K), lambda i, j, flags: (i, 0)),
        ],
        out_specs=pl.BlockSpec((block_b, block_m), lambda i, j, flags: (i, j)),
    )

    out_padded = pl.pallas_call(
        _scatter_scores_kernel,
        out_shape=jax.ShapeDtypeStruct((B_pad, M_pad), out_dtype),
        grid_spec=grid_spec,
        compiler_params=pltpu.CompilerParams(
            dimension_semantics=("parallel", "parallel")),
        cost_estimate=pl.CostEstimate(
            flops=int(B_pad) * int(M_pad) * int(K),
            transcendentals=0,
            bytes_accessed=int(B_pad) * int(M_pad) * 4
                           + 2 * int(B_pad) * int(K) * 4),
    )(flags, labels_p, scores_p)

    return out_padded[:B, :num_mids]


def _reference(labels, scores, num_mids):
    """Pure-JAX reference mirroring the PyTorch result_to_row semantics."""
    B, K = labels.shape
    out = jnp.zeros((B, num_mids), dtype=jnp.float32)
    col = jnp.arange(num_mids, dtype=jnp.int32)[None, :]
    for k in range(K):
        out = jnp.where(col == labels[:, k:k + 1], scores[:, k:k + 1], out)
    return out


if __name__ == "__main__":
    # Synthetic "API responses": B images, up to K detections each, over a
    # label vocabulary (mids) of size M (not a multiple of 128 on purpose,
    # to exercise the lane-padding path; B not a multiple of 8 either).
    B, K, M = 10, 8, 1000

    key = jax.random.PRNGKey(0)
    k_lab, k_sc, k_drop = jax.random.split(key, 3)

    labels = jax.random.randint(k_lab, (B, K), 0, M, dtype=jnp.int32)
    scores = jax.random.uniform(k_sc, (B, K), dtype=jnp.float32)
    # Simulate some detections whose MID is not in our mids list -> skipped.
    drop = jax.random.bernoulli(k_drop, p=0.25, shape=(B, K))
    labels = jnp.where(drop, jnp.int32(-1), labels)

    # TODO(synk): ImageAnnotatorClient RPC + PIL->bytes conversion have no
    # Pallas equivalent; the kernel starts from the decoded (label, score) lists.

    ref = _reference(labels, scores, M)

    # 1) Default tiling (big tiles: 1x1 grid on this toy shape).
    out_default = gcloud_vision_scores(labels, scores, M)
    out_default = jax.block_until_ready(out_default)
    assert out_default.shape == (B, M)
    assert jnp.allclose(out_default, ref), "default-tiling mismatch vs reference"

    # 2) Small tiles to exercise a multi-tile (2, 8) grid and the
    #    empty-tile-skip path (8 detections spread over 1000 mids -> most
    #    (i, j) tiles are empty).
    out_tiled = gcloud_vision_scores(labels, scores, M, block_b=8, block_m=128)
    out_tiled = jax.block_until_ready(out_tiled)
    assert out_tiled.shape == (B, M)
    assert jnp.allclose(out_tiled, ref), "small-tiling mismatch vs reference"

    print("KERNEL_OK")
</pallas_src>

<mosaic_0001>
module attributes {stable_mosaic.version = 11 : i64} {
  func.func @_scatter_scores_kernel(%arg0: i32, %arg1: i32, %arg2: memref<1xi32, #tpu.memory_space<smem>>, %arg3: memref<16x8xi32, #tpu.memory_space<vmem>>, %arg4: memref<16x8xf32, #tpu.memory_space<vmem>>, %arg5: memref<16x1024xf32, #tpu.memory_space<vmem>>) attributes {dimension_semantics = [#tpu.dimension_semantics<parallel>, #tpu.dimension_semantics<parallel>], iteration_bounds = array<i64: 1, 1>, scalar_prefetch = 1 : i64, scratch_operands = 0 : i64, tpu.core_type = #tpu.core_type<tc>, window_params = [{transform_indices = @transform_0, window_bounds = array<i64: 16, 8>}, {transform_indices = @transform_1, window_bounds = array<i64: 16, 8>}, {transform_indices = @transform_2, window_bounds = array<i64: 16, 1024>}]} {
    %c1_i32 = arith.constant 1 : i32
    %0 = arith.muli %arg0, %c1_i32 : i32
    %1 = arith.addi %0, %arg1 : i32
    %2 = arith.index_cast %1 : i32 to index
    %3 = memref.load %arg2[%2] : memref<1xi32, #tpu.memory_space<smem>>
    %c0_i32 = arith.constant 0 : i32
    %4 = arith.cmpi eq, %3, %c0_i32 : i32
    %5 = arith.extui %4 : i1 to i32
    %c0_i32_0 = arith.constant 0 : i32
    %6 = arith.cmpi ne, %5, %c0_i32_0 : i32
    scf.if %6 {
      %cst = arith.constant 0.000000e+00 : f32
      %10 = vector.broadcast %cst : f32 to vector<16x1024xf32>
      %c0 = arith.constant 0 : index
      %c0_3 = arith.constant 0 : index
      %11 = vector.load %arg5[%c0, %c0_3] : memref<16x1024xf32, #tpu.memory_space<vmem>>, vector<16x1024xf32>
      tpu.vector_store %arg5[%c0, %c0_3], %10 {strides = array<i32>} : memref<16x1024xf32, #tpu.memory_space<vmem>>, vector<16x1024xf32>,
    } else {
    }
    %c0_i32_1 = arith.constant 0 : i32
    %7 = arith.cmpi ne, %3, %c0_i32_1 : i32
    %8 = arith.extui %7 : i1 to i32
    %c0_i32_2 = arith.constant 0 : i32
    %9 = arith.cmpi ne, %8, %c0_i32_2 : i32
    scf.if %9 {
      %c0 = arith.constant 0 : index
      %c0_3 = arith.constant 0 : index
      %10 = vector.load %arg3[%c0, %c0_3] : memref<16x8xi32, #tpu.memory_space<vmem>>, vector<16x8xi32>
      %c1024_i32 = arith.constant 1024 : i32
      %11 = arith.muli %arg1, %c1024_i32 : i32
      %12 = vector.broadcast %11 : i32 to vector<16x8xi32>
      %13 = arith.subi %10, %12 : vector<16x8xi32>
      %c0_4 = arith.constant 0 : index
      %c0_5 = arith.constant 0 : index
      %14 = vector.load %arg4[%c0_4, %c0_5] : memref<16x8xf32, #tpu.memory_space<vmem>>, vector<16x8xf32>
      %15 = tpu.iota {dimensions = array<i32: 1>} : vector<16x1024xi32>
      %16 = vector.extract_strided_slice %13 {offsets = [0, 0], sizes = [16, 1], strides = [1, 1]} : vector<16x8xi32> to vector<16x1xi32>
      %17 = vector.broadcast %16 : vector<16x1xi32> to vector<16x1024xi32>
      %18 = arith.cmpi eq, %15, %17 : vector<16x1024xi32>
      %19 = vector.extract_strided_slice %14 {offsets = [0, 0], sizes = [16, 1], strides = [1, 1]} : vector<16x8xf32> to vector<16x1xf32>
      %cst = arith.constant 0.000000e+00 : f32
      %20 = vector.shape_cast %19 : vector<16x1xf32> to vector<16x1xf32>
      %21 = vector.broadcast %20 : vector<16x1xf32> to vector<16x1024xf32>
      %22 = vector.broadcast %cst : f32 to vector<16x1024xf32>
      %23 = arith.select %18, %21, %22 : vector<16x1024xi1>, vector<16x1024xf32>
      %24 = vector.extract_strided_slice %13 {offsets = [0, 1], sizes = [16, 1], strides = [1, 1]} : vector<16x8xi32> to vector<16x1xi32>
      %25 = vector.broadcast %24 : vector<16x1xi32> to vector<16x1024xi32>
      %26 = arith.cmpi eq, %15, %25 : vector<16x1024xi32>
      %27 = vector.extract_strided_slice %14 {offsets = [0, 1], sizes = [16, 1], strides = [1, 1]} : vector<16x8xf32> to vector<16x1xf32>
      %28 = vector.shape_cast %27 : vector<16x1xf32> to vector<16x1xf32>
      %29 = vector.broadcast %28 : vector<16x1xf32> to vector<16x1024xf32>
      %30 = arith.select %26, %29, %23 : vector<16x1024xi1>, vector<16x1024xf32>
      %31 = vector.extract_strided_slice %13 {offsets = [0, 2], sizes = [16, 1], strides = [1, 1]} : vector<16x8xi32> to vector<16x1xi32>
      %32 = vector.broadcast %31 : vector<16x1xi32> to vector<16x1024xi32>
      %33 = arith.cmpi eq, %15, %32 : vector<16x1024xi32>
      %34 = vector.extract_strided_slice %14 {offsets = [0, 2], sizes = [16, 1], strides = [1, 1]} : vector<16x8xf32> to vector<16x1xf32>
      %35 = vector.shape_cast %34 : vector<16x1xf32> to vector<16x1xf32>
      %36 = vector.broadcast %35 : vector<16x1xf32> to vector<16x1024xf32>
      %37 = arith.select %33, %36, %30 : vector<16x1024xi1>, vector<16x1024xf32>
      %38 = vector.extract_strided_slice %13 {offsets = [0, 3], sizes = [16, 1], strides = [1, 1]} : vector<16x8xi32> to vector<16x1xi32>
      %39 = vector.broadcast %38 : vector<16x1xi32> to vector<16x1024xi32>
      %40 = arith.cmpi eq, %15, %39 : vector<16x1024xi32>
      %41 = vector.extract_strided_slice %14 {offsets = [0, 3], sizes = [16, 1], strides = [1, 1]} : vector<16x8xf32> to vector<16x1xf32>
      %42 = vector.shape_cast %41 : vector<16x1xf32> to vector<16x1xf32>
      %43 = vector.broadcast %42 : vector<16x1xf32> to vector<16x1024xf32>
      %44 = arith.select %40, %43, %37 : vector<16x1024xi1>, vector<16x1024xf32>
      %45 = vector.extract_strided_slice %13 {offsets = [0, 4], sizes = [16, 1], strides = [1, 1]} : vector<16x8xi32> to vector<16x1xi32>
      %46 = vector.broadcast %45 : vector<16x1xi32> to vector<16x1024xi32>
      %47 = arith.cmpi eq, %15, %46 : vector<16x1024xi32>
      %48 = vector.extract_strided_slice %14 {offsets = [0, 4], sizes = [16, 1], strides = [1, 1]} : vector<16x8xf32> to vector<16x1xf32>
      %49 = vector.shape_cast %48 : vector<16x1xf32> to vector<16x1xf32>
      %50 = vector.broadcast %49 : vector<16x1xf32> to vector<16x1024xf32>
      %51 = arith.select %47, %50, %44 : vector<16x1024xi1>, vector<16x1024xf32>
      %52 = vector.extract_strided_slice %13 {offsets = [0, 5], sizes = [16, 1], strides = [1, 1]} : vector<16x8xi32> to vector<16x1xi32>
      %53 = vector.broadcast %52 : vector<16x1xi32> to vector<16x1024xi32>
      %54 = arith.cmpi eq, %15, %53 : vector<16x1024xi32>
      %55 = vector.extract_strided_slice %14 {offsets = [0, 5], sizes = [16, 1], strides = [1, 1]} : vector<16x8xf32> to vector<16x1xf32>
      %56 = vector.shape_cast %55 : vector<16x1xf32> to vector<16x1xf32>
      %57 = vector.broadcast %56 : vector<16x1xf32> to vector<16x1024xf32>
      %58 = arith.select %54, %57, %51 : vector<16x1024xi1>, vector<16x1024xf32>
      %59 = vector.extract_strided_slice %13 {offsets = [0, 6], sizes = [16, 1], strides = [1, 1]} : vector<16x8xi32> to vector<16x1xi32>
      %60 = vector.broadcast %59 : vector<16x1xi32> to vector<16x1024xi32>
      %61 = arith.cmpi eq, %15, %60 : vector<16x1024xi32>
      %62 = vector.extract_strided_slice %14 {offsets = [0, 6], sizes = [16, 1], strides = [1, 1]} : vector<16x8xf32> to vector<16x1xf32>
      %63 = vector.shape_cast %62 : vector<16x1xf32> to vector<16x1xf32>
      %64 = vector.broadcast %63 : vector<16x1xf32> to vector<16x1024xf32>
      %65 = arith.select %61, %64, %58 : vector<16x1024xi1>, vector<16x1024xf32>
      %66 = vector.extract_strided_slice %13 {offsets = [0, 7], sizes = [16, 1], strides = [1, 1]} : vector<16x8xi32> to vector<16x1xi32>
      %67 = vector.broadcast %66 : vector<16x1xi32> to vector<16x1024xi32>
      %68 = arith.cmpi eq, %15, %67 : vector<16x1024xi32>
      %69 = vector.extract_strided_slice %14 {offsets = [0, 7], sizes = [16, 1], strides = [1, 1]} : vector<16x8xf32> to vector<16x1xf32>
      %70 = vector.shape_cast %69 : vector<16x1xf32> to vector<16x1xf32>
      %71 = vector.broadcast %70 : vector<16x1xf32> to vector<16x1024xf32>
      %72 = arith.select %68, %71, %65 : vector<16x1024xi1>, vector<16x1024xf32>
      %c0_6 = arith.constant 0 : index
      %c0_7 = arith.constant 0 : index
      %73 = vector.load %arg5[%c0_6, %c0_7] : memref<16x1024xf32, #tpu.memory_space<vmem>>, vector<16x1024xf32>
      tpu.vector_store %arg5[%c0_6, %c0_7], %72 {strides = array<i32>} : memref<16x1024xf32, #tpu.memory_space<vmem>>, vector<16x1024xf32>,
    } else {
    }
    return
  }
  func.func @transform_0(%arg0: i32, %arg1: i32, %arg2: memref<1xi32, #tpu.memory_space<smem>>) -> (i32, i32) {
    %c0_i32 = arith.constant 0 : i32
    %c0_i32_0 = arith.constant 0 : i32
    return %arg0, %c0_i32 : i32, i32
  }
  func.func @transform_1(%arg0: i32, %arg1: i32, %arg2: memref<1xi32, #tpu.memory_space<smem>>) -> (i32, i32) {
    %c0_i32 = arith.constant 0 : i32
    %c0_i32_0 = arith.constant 0 : i32
    return %arg0, %c0_i32 : i32, i32
  }
  func.func @transform_2(%arg0: i32, %arg1: i32, %arg2: memref<1xi32, #tpu.memory_space<smem>>) -> (i32, i32) {
    %c0_i32 = arith.constant 0 : i32
    return %arg0, %arg1 : i32, i32
  }
}

</mosaic_0001>

<bundles_post_ra>
// kernel: tpu_custom_call.1
= control target key start
LH: loop header
LB: loop body
LE: loop exit
PB: predicated region body
PF: predicated region fallthrough
CT: control target
= control target key end

     0   :  { %9 = vsyncpa [#allocation5], 0  ;;  %s1176_s0 = inlined_call_operand.<no memory space> [shape: s32[1], index: 0, kind: input, shape index: {}]   ;;  %s1177_s1 = inlined_call_operand.vmem [shape: s32[16,8], index: 1, kind: input, shape index: {}]   ;;  %s1178_s2 = inlined_call_operand.vmem [shape: f32[16,8], index: 2, kind: input, shape index: {}]   ;;  %s1179_s3 = inlined_call_operand.hbm [shape: f32[16,1024], index: 3, kind: output, shape index: {}]  }
   0x1   :  { %p459_p0 = scmp.ne.s32.totalorder %s1176_s0, 0 }
   0x2   :  { %v513_v0 = vmov (!%p459_p0), 0.0  }
   0x3   :  { %19 = sbr.rel (%p459_p0) target bundleno = 11 (0xb), region = 13  ;;  %20 = vst [vmem:[#allocation4] sm:$0xff] (!%p459_p0), %v513_v0  ;;  %21 = vst [vmem:[#allocation4 + $0x8] sm:$0xff] (!%p459_p0), %v513_v0 }
   0x4   :  { %22 = vst [vmem:[#allocation4 + $0x10] sm:$0xff] (!%p459_p0), %v513_v0  ;;  %23 = vst [vmem:[#allocation4 + $0x18] sm:$0xff] (!%p459_p0), %v513_v0 }
   0x5   :  { %24 = vst [vmem:[#allocation4 + $0x20] sm:$0xff] (!%p459_p0), %v513_v0  ;;  %25 = vst [vmem:[#allocation4 + $0x28] sm:$0xff] (!%p459_p0), %v513_v0 }
   0x6   :  { %26 = vst [vmem:[#allocation4 + $0x30] sm:$0xff] (!%p459_p0), %v513_v0  ;;  %27 = vst [vmem:[#allocation4 + $0x38] sm:$0xff] (!%p459_p0), %v513_v0 }
   0x7   :  { %28 = vst [vmem:[#allocation4 + $0x40] sm:$0xff] (!%p459_p0), %v513_v0  ;;  %29 = vst [vmem:[#allocation4 + $0x48] sm:$0xff] (!%p459_p0), %v513_v0 }
   0x8   :  { %30 = vst [vmem:[#allocation4 + $0x50] sm:$0xff] (!%p459_p0), %v513_v0  ;;  %31 = vst [vmem:[#allocation4 + $0x58] sm:$0xff] (!%p459_p0), %v513_v0 }
   0x9   :  { %32 = vst [vmem:[#allocation4 + $0x60] sm:$0xff] (!%p459_p0), %v513_v0  ;;  %33 = vst [vmem:[#allocation4 + $0x68] sm:$0xff] (!%p459_p0), %v513_v0 }
   0xa   :  { %34 = vst [vmem:[#allocation4 + $0x70] sm:$0xff] %v513_v0  ;;  %35 = vst [vmem:[#allocation4 + $0x78] sm:$0xff] %v513_v0 }
   0xb PF:  { %p460_p1 = scmp.eq.s32.totalorder %s1176_s0, 0 }
   0xc   :  { %v46_v1 = vld [vmem:[%s1178_s2] sm:$0xff] (!%p460_p1)  ;;  %v514_v3 = vmov (!%p460_p1), 0   ;;  %v47_v4 = vld [vmem:[%s1178_s2 + $0x8] sm:$0xff] (!%p460_p1)  ;;  %v515_v6 = vmov (!%p460_p1), 1   ;;  %v516_v7 = vmov (!%p460_p1), 2   ;;  %v517_v8 = vmov (!%p460_p1), 3  }
   0xd   :  { %39 = sbr.rel (%p460_p1) target bundleno = 229 (0xe5), region = 17  ;;  %v40_v2 = vld [vmem:[%s1177_s1] sm:$0xff] (!%p460_p1)  ;;  %474 = vset.pattern.permute.xlu1 (!%p460_p1), %v514_v3  ;;  %473 = vset.pattern.permute.xlu0 (!%p460_p1), %v514_v3  ;;  %v41_v5 = vld [vmem:[%s1177_s1 + $0x8] sm:$0xff] (!%p460_p1)  ;;  %v518_v9 = vmov (!%p460_p1), 4   ;;  %v519_v10 = vmov (!%p460_p1), 5   ;;  %v520_v11 = vmov (!%p460_p1), 6   ;;  %v48_v17 = vlaneseq (!%p460_p1) }
   0xe   :  { %81 = vperm.xlu1 (!%p460_p1), %474, %v46_v1   ;;  %58 = vperm.xlu0 (!%p460_p1), %473, %v40_v2   ;;  %v521_v12 = vmov (!%p460_p1), 7  }
   0xf   :  { %v567_v19 = vand.u32 (!%p460_p1), 127, %v48_v17 }
  0x11   :  { %v570_v21 = vadd.s32 (!%p460_p1), 128, %v567_v19  ;;  %v573_v22 = vadd.s32 (!%p460_p1), 256, %v567_v19  ;;  %v576_v23 = vadd.s32 (!%p460_p1), 384, %v567_v19  ;;  %v581_v25 = vadd.s32 (!%p460_p1), 512, %v567_v19 }
  0x12   :  { %86 = vperm.xlu1 (!%p460_p1), %474, %v47_v4   ;;  %61 = vperm.xlu0 (!%p460_p1), %473, %v41_v5   ;;  %v584_v26 = vadd.s32 (!%p460_p1), 640, %v567_v19  ;;  %v587_v27 = vadd.s32 (!%p460_p1), 768, %v567_v19  ;;  %v590_v28 = vadd.s32 (!%p460_p1), 896, %v567_v19 }
  0x16   :  { %476 = vset.pattern.permute.xlu1 %v515_v6  ;;  %475 = vset.pattern.permute.xlu0 %v515_v6 }
  0x17   :  { %109 = vperm.xlu1 %476, %v41_v5   ;;  %106 = vperm.xlu0 %475, %v40_v2  }
  0x1b   :  { %128 = vperm.xlu1 %476, %v46_v1   ;;  %132 = vperm.xlu0 %475, %v47_v4  }
  0x1f   :  { %477 = vset.pattern.permute.xlu1 %v516_v7  ;;  %478 = vset.pattern.permute.xlu0 %v516_v7 }
  0x20   :  { %152 = vperm.xlu1 %477, %v40_v2   ;;  %155 = vperm.xlu0 %478, %v41_v5  }
  0x24   :  { %174 = vperm.xlu1 %477, %v46_v1   ;;  %479 = vset.pattern.permute.xlu0 %v517_v8 }
  0x25   :  { %198 = vperm.xlu0 %479, %v40_v2  }
  0x28   :  { %178 = vperm.xlu1 %477, %v47_v4  }
  0x29   :  { %224 = vperm.xlu0 %479, %v47_v4  }
  0x2c   :  { %480 = vset.pattern.permute.xlu1 %v517_v8 }
  0x2d   :  { %201 = vperm.xlu1 %480, %v41_v5   ;;  %482 = vset.pattern.permute.xlu0 %v518_v9 }
  0x2e   :  { %247 = vperm.xlu0 %482, %v41_v5  }
  0x31   :  { %220 = vperm.xlu1 %480, %v46_v1  }
  0x32   :  { %483 = vset.pattern.permute.xlu0 %v519_v10 }
  0x33   :  { %290 = vperm.xlu0 %483, %v40_v2  }
  0x35   :  { %481 = vset.pattern.permute.xlu1 %v518_v9 }
  0x36   :  { %244 = vperm.xlu1 %481, %v40_v2  }
  0x37   :  { %316 = vperm.xlu0 %483, %v47_v4  }
  0x3a   :  { %266 = vperm.xlu1 %481, %v46_v1  }
  0x3b   :  { %486 = vset.pattern.permute.xlu0 %v520_v11 }
  0x3c   :  { %339 = vperm.xlu0 %486, %v41_v5  }
  0x3e   :  { %270 = vperm.xlu1 %481, %v47_v4  }
  0x40   :  { %487 = vset.pattern.permute.xlu0 %v521_v12 }
  0x41   :  { %382 = vperm.xlu0 %487, %v40_v2  }
  0x42   :  { %484 = vset.pattern.permute.xlu1 %v519_v10 }
  0x43   :  { %293 = vperm.xlu1 %484, %v41_v5  }
  0x45   :  { %408 = vperm.xlu0 %487, %v47_v4  }
  0x47   :  { %312 = vperm.xlu1 %484, %v46_v1  }
  0x4b   :  { %485 = vset.pattern.permute.xlu1 %v520_v11 }
  0x4c   :  { %336 = vperm.xlu1 %485, %v40_v2  }
  0x50   :  { %358 = vperm.xlu1 %485, %v46_v1  }
  0x54   :  { %362 = vperm.xlu1 %485, %v47_v4  }
  0x58   :  { %488 = vset.pattern.permute.xlu1 %v521_v12 }
  0x59   :  { %385 = vperm.xlu1 %488, %v41_v5  }
  0x5d   :  { %404 = vperm.xlu1 %488, %v46_v1  }
  0x8d   :  { %v82_v13 = vpop.permute.xlu1 %81  ;;  %v59_v15 = vpop.permute.xlu0 %58 }
  0x8e   :  { %vm63_vm0 = vcmp.eq.s32.totalorder %v567_v19, %v59_v15  ;;  %vm64_vm1 = vcmp.eq.s32.totalorder %v570_v21, %v59_v15  ;;  %vm65_vm2 = vcmp.eq.s32.totalorder %v573_v22, %v59_v15  ;;  %vm66_vm3 = vcmp.eq.s32.totalorder %v576_v23, %v59_v15 }
  0x8f   :  { %vm67_vm4 = vcmp.eq.s32.totalorder %v581_v25, %v59_v15  ;;  %vm68_vm5 = vcmp.eq.s32.totalorder %v584_v26, %v59_v15  ;;  %vm69_vm6 = vcmp.eq.s32.totalorder %v587_v27, %v59_v15  ;;  %vm70_vm7 = vcmp.eq.s32.totalorder %v590_v28, %v59_v15 }
  0x90   :  { %v89_v31 = vsel %vm63_vm0, %v82_v13, 0.0  ;;  %v90_v32 = vsel %vm64_vm1, %v82_v13, 0.0  ;;  %v91_v33 = vsel %vm65_vm2, %v82_v13, 0.0  ;;  %v92_v34 = vsel %vm66_vm3, %v82_v13, 0.0 }
  0x91   :  { %v87_v14 = vpop.permute.xlu1 %86  ;;  %v62_v20 = vpop.permute.xlu0 %61  ;;  %v93_v37 = vsel %vm67_vm4, %v82_v13, 0.0  ;;  %v94_v38 = vsel %vm68_vm5, %v82_v13, 0.0  ;;  %v95_v39 = vsel %vm69_vm6, %v82_v13, 0.0  ;;  %v96_v40 = vsel %vm70_vm7, %v82_v13, 0.0 }
  0x92   :  { %vm71_vm8 = vcmp.eq.s32.totalorder %v567_v19, %v62_v20  ;;  %vm72_vm9 = vcmp.eq.s32.totalorder %v570_v21, %v62_v20  ;;  %vm73_vm10 = vcmp.eq.s32.totalorder %v573_v22, %v62_v20  ;;  %vm74_vm11 = vcmp.eq.s32.totalorder %v576_v23, %v62_v20 }
  0x93   :  { %vm75_vm12 = vcmp.eq.s32.totalorder %v581_v25, %v62_v20  ;;  %vm76_vm13 = vcmp.eq.s32.totalorder %v584_v26, %v62_v20  ;;  %vm77_vm14 = vcmp.eq.s32.totalorder %v587_v27, %v62_v20  ;;  %vm78_vm15 = vcmp.eq.s32.totalorder %v590_v28, %v62_v20 }
  0x94   :  { %v97_v41 = vsel %vm71_vm8, %v87_v14, 0.0  ;;  %v98_v42 = vsel %vm72_vm9, %v87_v14, 0.0  ;;  %v99_v43 = vsel %vm73_vm10, %v87_v14, 0.0  ;;  %v100_v44 = vsel %vm74_vm11, %v87_v14, 0.0 }
  0x95   :  { %v101_v45 = vsel %vm75_vm12, %v87_v14, 0.0  ;;  %v102_v46 = vsel %vm76_vm13, %v87_v14, 0.0  ;;  %v103_v47 = vsel %vm77_vm14, %v87_v14, 0.0  ;;  %v104_v48 = vsel %vm78_vm15, %v87_v14, 0.0 }
  0x96   :  { %v563_v16 = vpop.permute.xlu1 %109  ;;  %v592_v29 = vpop.permute.xlu0 %106 }
  0x97   :  { %vm119_vm0 = vcmp.eq.s32.totalorder %v567_v19, %v563_v16  ;;  %vm120_vm1 = vcmp.eq.s32.totalorder %v570_v21, %v563_v16  ;;  %vm121_vm2 = vcmp.eq.s32.totalorder %v573_v22, %v563_v16  ;;  %vm122_vm3 = vcmp.eq.s32.totalorder %v576_v23, %v563_v16 }
  0x98   :  { %vm111_vm4 = vcmp.eq.s32.totalorder %v567_v19, %v592_v29  ;;  %vm112_vm5 = vcmp.eq.s32.totalorder %v570_v21, %v592_v29  ;;  %vm113_vm6 = vcmp.eq.s32.totalorder %v573_v22, %v592_v29  ;;  %vm114_vm7 = vcmp.eq.s32.totalorder %v576_v23, %v592_v29 }
  0x99   :  { %vm115_vm8 = vcmp.eq.s32.totalorder %v581_v25, %v592_v29  ;;  %vm116_vm9 = vcmp.eq.s32.totalorder %v584_v26, %v592_v29  ;;  %vm117_vm10 = vcmp.eq.s32.totalorder %v587_v27, %v592_v29  ;;  %vm118_vm11 = vcmp.eq.s32.totalorder %v590_v28, %v592_v29 }
  0x9a   :  { %v565_v18 = vpop.permute.xlu1 %128  ;;  %v133_v35 = vpop.permute.xlu0 %132  ;;  %vm123_vm12 = vcmp.eq.s32.totalorder %v581_v25, %v563_v16  ;;  %vm124_vm13 = vcmp.eq.s32.totalorder %v584_v26, %v563_v16  ;;  %vm125_vm14 = vcmp.eq.s32.totalorder %v587_v27, %v563_v16  ;;  %vm126_vm15 = vcmp.eq.s32.totalorder %v590_v28, %v563_v16 }
  0x9b   :  { %v135_v51 = vsel %vm111_vm4, %v565_v18, %v89_v31  ;;  %v136_v52 = vsel %vm112_vm5, %v565_v18, %v90_v32  ;;  %v137_v53 = vsel %vm113_vm6, %v565_v18, %v91_v33  ;;  %v138_v54 = vsel %vm114_vm7, %v565_v18, %v92_v34 }
  0x9c   :  { %v139_v56 = vsel %vm115_vm8, %v565_v18, %v93_v37  ;;  %v140_v57 = vsel %vm116_vm9, %v565_v18, %v94_v38  ;;  %v141_v58 = vsel %vm117_vm10, %v565_v18, %v95_v39  ;;  %v142_v59 = vsel %vm118_vm11, %v565_v18, %v96_v40 }
  0x9d   :  { %v143_v61 = vsel %vm119_vm0, %v133_v35, %v97_v41  ;;  %v144_v62 = vsel %vm120_vm1, %v133_v35, %v98_v42  ;;  %v145_v63 = vsel %vm121_vm2, %v133_v35, %v99_v43  ;;  %v146_v0 = vsel %vm122_vm3, %v133_v35, %v100_v44 }
  0x9e   :  { %v147_v1 = vsel %vm123_vm12, %v133_v35, %v101_v45  ;;  %v148_v2 = vsel %vm124_vm13, %v133_v35, %v102_v46  ;;  %v149_v3 = vsel %vm125_vm14, %v133_v35, %v103_v47  ;;  %v150_v4 = vsel %vm126_vm15, %v133_v35, %v104_v48 }
  0x9f   :  { %v578_v24 = vpop.permute.xlu1 %152  ;;  %v622_v49 = vpop.permute.xlu0 %155 }
  0xa0   :  { %vm157_vm0 = vcmp.eq.s32.totalorder %v567_v19, %v578_v24  ;;  %vm158_vm1 = vcmp.eq.s32.totalorder %v570_v21, %v578_v24  ;;  %vm159_vm2 = vcmp.eq.s32.totalorder %v573_v22, %v578_v24  ;;  %vm160_vm3 = vcmp.eq.s32.totalorder %v576_v23, %v578_v24 }
  0xa1   :  { %vm161_vm4 = vcmp.eq.s32.totalorder %v581_v25, %v578_v24  ;;  %vm162_vm5 = vcmp.eq.s32.totalorder %v584_v26, %v578_v24  ;;  %vm163_vm6 = vcmp.eq.s32.totalorder %v587_v27, %v578_v24  ;;  %vm164_vm7 = vcmp.eq.s32.totalorder %v590_v28, %v578_v24 }
  0xa2   :  { %vm165_vm8 = vcmp.eq.s32.totalorder %v567_v19, %v622_v49  ;;  %vm166_vm9 = vcmp.eq.s32.totalorder %v570_v21, %v622_v49  ;;  %vm167_vm10 = vcmp.eq.s32.totalorder %v573_v22, %v622_v49  ;;  %vm168_vm11 = vcmp.eq.s32.totalorder %v576_v23, %v622_v49 }
  0xa3   :  { %v598_v30 = vpop.permute.xlu1 %174  ;;  %vm169_vm12 = vcmp.eq.s32.totalorder %v581_v25, %v622_v49  ;;  %vm170_vm13 = vcmp.eq.s32.totalorder %v584_v26, %v622_v49  ;;  %vm171_vm14 = vcmp.eq.s32.totalorder %v587_v27, %v622_v49  ;;  %vm172_vm15 = vcmp.eq.s32.totalorder %v590_v28, %v622_v49 }
  0xa4   :  { %v668_v60 = vpop.permute.xlu0 %198  ;;  %v181_v7 = vsel %vm157_vm0, %v598_v30, %v135_v51  ;;  %v182_v8 = vsel %vm158_vm1, %v598_v30, %v136_v52  ;;  %v183_v9 = vsel %vm159_vm2, %v598_v30, %v137_v53  ;;  %v184_v10 = vsel %vm160_vm3, %v598_v30, %v138_v54 }
  0xa5   :  { %v185_v11 = vsel %vm161_vm4, %v598_v30, %v139_v56  ;;  %v186_v12 = vsel %vm162_vm5, %v598_v30, %v140_v57  ;;  %v187_v13 = vsel %vm163_vm6, %v598_v30, %v141_v58  ;;  %v188_v14 = vsel %vm164_vm7, %v598_v30, %v142_v59 }
  0xa6   :  { %vm203_vm0 = vcmp.eq.s32.totalorder %v567_v19, %v668_v60  ;;  %vm204_vm1 = vcmp.eq.s32.totalorder %v570_v21, %v668_v60  ;;  %vm205_vm2 = vcmp.eq.s32.totalorder %v573_v22, %v668_v60  ;;  %vm206_vm3 = vcmp.eq.s32.totalorder %v576_v23, %v668_v60 }
  0xa7   :  { %v608_v36 = vpop.permute.xlu1 %178 }
  0xa8   :  { %v225_v6 = vpop.permute.xlu0 %224  ;;  %v189_v17 = vsel %vm165_vm8, %v608_v36, %v143_v61  ;;  %v190_v18 = vsel %vm166_vm9, %v608_v36, %v144_v62  ;;  %v191_v20 = vsel %vm167_vm10, %v608_v36, %v145_v63  ;;  %v192_v24 = vsel %vm168_vm11, %v608_v36, %v146_v0 }
  0xa9   :  { %v193_v30 = vsel %vm169_vm12, %v608_v36, %v147_v1  ;;  %v194_v31 = vsel %vm170_vm13, %v608_v36, %v148_v2  ;;  %v195_v32 = vsel %vm171_vm14, %v608_v36, %v149_v3  ;;  %v196_v33 = vsel %vm172_vm15, %v608_v36, %v150_v4 }
  0xaa   :  { %vm1180_vm12 = vcmp.eq.s32.totalorder %v581_v25, %v668_v60  ;;  %vm1181_vm13 = vcmp.eq.s32.totalorder %v584_v26, %v668_v60  ;;  %vm1182_vm14 = vcmp.eq.s32.totalorder %v587_v27, %v668_v60  ;;  %vm1183_vm15 = vcmp.eq.s32.totalorder %v590_v28, %v668_v60 }
  0xac   :  { %v632_v50 = vpop.permute.xlu1 %201 }
  0xad   :  { %v778_v16 = vpop.permute.xlu0 %247  ;;  %vm211_vm7 = vcmp.eq.s32.totalorder %v567_v19, %v632_v50  ;;  %vm212_vm8 = vcmp.eq.s32.totalorder %v570_v21, %v632_v50  ;;  %vm213_vm6 = vcmp.eq.s32.totalorder %v573_v22, %v632_v50  ;;  %vm214_vm9 = vcmp.eq.s32.totalorder %v576_v23, %v632_v50 }
  0xae   :  { %vm215_vm10 = vcmp.eq.s32.totalorder %v581_v25, %v632_v50  ;;  %vm216_vm11 = vcmp.eq.s32.totalorder %v584_v26, %v632_v50  ;;  %vm217_vm5 = vcmp.eq.s32.totalorder %v587_v27, %v632_v50  ;;  %vm218_vm4 = vcmp.eq.s32.totalorder %v590_v28, %v632_v50 }
  0xaf   :  { %v235_v34 = vsel %vm211_vm7, %v225_v6, %v189_v17  ;;  %v236_v35 = vsel %vm212_vm8, %v225_v6, %v190_v18  ;;  %v237_v37 = vsel %vm213_vm6, %v225_v6, %v191_v20  ;;  %v238_v38 = vsel %vm214_vm9, %v225_v6, %v192_v24 }
  0xb0   :  { %v662_v55 = vpop.permute.xlu1 %220  ;;  %v830_v39 = vsel %vm215_vm10, %v225_v6, %v193_v30  ;;  %v832_v40 = vsel %vm216_vm11, %v225_v6, %v194_v31  ;;  %v834_v41 = vsel %vm217_vm5, %v225_v6, %v195_v32  ;;  %v836_v42 = vsel %vm218_vm4, %v225_v6, %v196_v33 }
  0xb1   :  { %v227_v44 = vsel %vm203_vm0, %v662_v55, %v181_v7  ;;  %v228_v36 = vsel %vm204_vm1, %v662_v55, %v182_v8  ;;  %v229_v45 = vsel %vm205_vm2, %v662_v55, %v183_v9  ;;  %v230_v46 = vsel %vm206_vm3, %v662_v55, %v184_v10 }
  0xb2   :  { %v838_v43 = vpop.permute.xlu0 %290  ;;  %v231_v48 = vsel %vm1180_vm12, %v662_v55, %v185_v11  ;;  %v232_v49 = vsel %vm1181_vm13, %v662_v55, %v186_v12  ;;  %v233_v50 = vsel %vm1182_vm14, %v662_v55, %v187_v13  ;;  %v234_v51 = vsel %vm1183_vm15, %v662_v55, %v188_v14 }
  0xb3   :  { %vm257_vm0 = vcmp.eq.s32.totalorder %v567_v19, %v778_v16  ;;  %vm258_vm1 = vcmp.eq.s32.totalorder %v570_v21, %v778_v16  ;;  %vm259_vm2 = vcmp.eq.s32.totalorder %v573_v22, %v778_v16  ;;  %vm260_vm3 = vcmp.eq.s32.totalorder %v576_v23, %v778_v16 }
  0xb4   :  { %vm299_vm14 = vcmp.eq.s32.totalorder %v581_v25, %v838_v43  ;;  %vm300_vm15 = vcmp.eq.s32.totalorder %v584_v26, %v838_v43  ;;  %vm301_vm13 = vcmp.eq.s32.totalorder %v587_v27, %v838_v43  ;;  %vm1184_vm4 = vcmp.eq.s32.totalorder %v581_v25, %v778_v16 }
  0xb5   :  { %v710_v5 = vpop.permute.xlu1 %244 }
  0xb6   :  { %vm249_vm8 = vcmp.eq.s32.totalorder %v567_v19, %v710_v5  ;;  %vm250_vm9 = vcmp.eq.s32.totalorder %v570_v21, %v710_v5  ;;  %vm251_vm10 = vcmp.eq.s32.totalorder %v573_v22, %v710_v5  ;;  %vm252_vm11 = vcmp.eq.s32.totalorder %v576_v23, %v710_v5  ;;  %v317_v53 = vpop.permute.xlu0 %316 }
  0xb7   :  { %vm253_vm7 = vcmp.eq.s32.totalorder %v581_v25, %v710_v5  ;;  %vm254_vm6 = vcmp.eq.s32.totalorder %v584_v26, %v710_v5  ;;  %vm255_vm5 = vcmp.eq.s32.totalorder %v587_v27, %v710_v5  ;;  %vm256_vm12 = vcmp.eq.s32.totalorder %v590_v28, %v710_v5 }
  0xb9   :  { %v760_v15 = vpop.permute.xlu1 %266 }
  0xba   :  { %v273_v54 = vsel %vm249_vm8, %v760_v15, %v227_v44  ;;  %v274_v55 = vsel %vm250_vm9, %v760_v15, %v228_v36  ;;  %v275_v56 = vsel %vm251_vm10, %v760_v15, %v229_v45  ;;  %v276_v57 = vsel %vm252_vm11, %v760_v15, %v230_v46 }
  0xbb   :  { %v277_v58 = vsel %vm253_vm7, %v760_v15, %v231_v48  ;;  %v278_v59 = vsel %vm254_vm6, %v760_v15, %v232_v49  ;;  %v279_v60 = vsel %vm255_vm5, %v760_v15, %v233_v50  ;;  %v280_v61 = vsel %vm256_vm12, %v760_v15, %v234_v51  ;;  %v960_v3 = vpop.permute.xlu0 %339 }
  0xbc   :  { %vm354_vm7 = vcmp.eq.s32.totalorder %v584_v26, %v960_v3  ;;  %vm1186_vm8 = vcmp.eq.s32.totalorder %v587_v27, %v778_v16  ;;  %vm1187_vm6 = vcmp.eq.s32.totalorder %v590_v28, %v778_v16 }
  0xbd   :  { %v804_v29 = vpop.permute.xlu1 %270 }
  0xbe   :  { %v281_v62 = vsel %vm257_vm0, %v804_v29, %v235_v34  ;;  %v282_v63 = vsel %vm258_vm1, %v804_v29, %v236_v35  ;;  %v283_v0 = vsel %vm259_vm2, %v804_v29, %v237_v37  ;;  %v284_v1 = vsel %vm260_vm3, %v804_v29, %v238_v38 }
  0xbf   :  { %v285_v4 = vsel %vm1184_vm4, %v804_v29, %v830_v39  ;;  %vm1185_vm3 = vcmp.eq.s32.totalorder %v584_v26, %v778_v16  ;;  %v287_v6 = vsel %vm1186_vm8, %v804_v29, %v834_v41  ;;  %v288_v7 = vsel %vm1187_vm6, %v804_v29, %v836_v42 }
  0xc0   :  { %v286_v5 = vsel %vm1185_vm3, %v804_v29, %v832_v40  ;;  %vm1188_vm4 = vcmp.eq.s32.totalorder %v567_v19, %v838_v43  ;;  %v1062_v33 = vpop.permute.xlu0 %382 }
  0xc2   :  { %v856_v47 = vpop.permute.xlu1 %293 }
  0xc3   :  { %vm303_vm0 = vcmp.eq.s32.totalorder %v567_v19, %v856_v47  ;;  %vm304_vm1 = vcmp.eq.s32.totalorder %v570_v21, %v856_v47  ;;  %vm305_vm5 = vcmp.eq.s32.totalorder %v573_v22, %v856_v47  ;;  %vm306_vm2 = vcmp.eq.s32.totalorder %v576_v23, %v856_v47 }
  0xc4   :  { %vm307_vm9 = vcmp.eq.s32.totalorder %v581_v25, %v856_v47  ;;  %vm308_vm10 = vcmp.eq.s32.totalorder %v584_v26, %v856_v47  ;;  %vm309_vm11 = vcmp.eq.s32.totalorder %v587_v27, %v856_v47  ;;  %vm310_vm12 = vcmp.eq.s32.totalorder %v590_v28, %v856_v47 }
  0xc5   :  { %v327_v8 = vsel %vm303_vm0, %v317_v53, %v281_v62  ;;  %v328_v9 = vsel %vm304_vm1, %v317_v53, %v282_v63  ;;  %v329_v10 = vsel %vm305_vm5, %v317_v53, %v283_v0  ;;  %v330_v11 = vsel %vm306_vm2, %v317_v53, %v284_v1 }
  0xc6   :  { %v313_v52 = vpop.permute.xlu1 %312  ;;  %v331_v13 = vsel %vm307_vm9, %v317_v53, %v285_v4  ;;  %v332_v14 = vsel %vm308_vm10, %v317_v53, %v286_v5  ;;  %v333_v15 = vsel %vm309_vm11, %v317_v53, %v287_v6  ;;  %v334_v16 = vsel %vm310_vm12, %v317_v53, %v288_v7 }
  0xc7   :  { %v319_v17 = vsel %vm1188_vm4, %v313_v52, %v273_v54  ;;  %vm1189_vm0 = vcmp.eq.s32.totalorder %v570_v21, %v838_v43  ;;  %vm1190_vm1 = vcmp.eq.s32.totalorder %v573_v22, %v838_v43  ;;  %vm1191_vm5 = vcmp.eq.s32.totalorder %v576_v23, %v838_v43 }
  0xc8   :  { %v320_v18 = vsel %vm1189_vm0, %v313_v52, %v274_v55  ;;  %v321_v20 = vsel %vm1190_vm1, %v313_v52, %v275_v56  ;;  %v322_v24 = vsel %vm1191_vm5, %v313_v52, %v276_v57  ;;  %v323_v29 = vsel %vm299_vm14, %v313_v52, %v277_v58 }
  0xc9   :  { %v324_v30 = vsel %vm300_vm15, %v313_v52, %v278_v59  ;;  %v325_v31 = vsel %vm301_vm13, %v313_v52, %v279_v60  ;;  %vm1192_vm2 = vcmp.eq.s32.totalorder %v590_v28, %v838_v43  ;;  %vm387_vm11 = vcmp.eq.s32.totalorder %v567_v19, %v1062_v33 }
  0xca   :  { %v326_v32 = vsel %vm1192_vm2, %v313_v52, %v280_v61  ;;  %vm389_vm4 = vcmp.eq.s32.totalorder %v573_v22, %v1062_v33  ;;  %vm390_vm0 = vcmp.eq.s32.totalorder %v576_v23, %v1062_v33  ;;  %vm391_vm1 = vcmp.eq.s32.totalorder %v581_v25, %v1062_v33  ;;  %v409_v52 = vpop.permute.xlu0 %408 }
  0xcb   :  { %v958_v2 = vpop.permute.xlu1 %336  ;;  %vm392_vm5 = vcmp.eq.s32.totalorder %v584_v26, %v1062_v33  ;;  %vm393_vm2 = vcmp.eq.s32.totalorder %v587_v27, %v1062_v33  ;;  %vm394_vm12 = vcmp.eq.s32.totalorder %v590_v28, %v1062_v33 }
  0xcc   :  { %vm341_vm6 = vcmp.eq.s32.totalorder %v567_v19, %v958_v2  ;;  %vm342_vm14 = vcmp.eq.s32.totalorder %v570_v21, %v958_v2  ;;  %vm343_vm3 = vcmp.eq.s32.totalorder %v573_v22, %v958_v2  ;;  %vm344_vm15 = vcmp.eq.s32.totalorder %v576_v23, %v958_v2 }
  0xcd   :  { %vm345_vm13 = vcmp.eq.s32.totalorder %v581_v25, %v958_v2  ;;  %vm346_vm8 = vcmp.eq.s32.totalorder %v584_v26, %v958_v2  ;;  %vm347_vm9 = vcmp.eq.s32.totalorder %v587_v27, %v958_v2  ;;  %vm348_vm10 = vcmp.eq.s32.totalorder %v590_v28, %v958_v2 }
  0xcf   :  { %v359_v12 = vpop.permute.xlu1 %358 }
  0xd0   :  { %v365_v35 = vsel %vm341_vm6, %v359_v12, %v319_v17  ;;  %v366_v37 = vsel %vm342_vm14, %v359_v12, %v320_v18  ;;  %v367_v38 = vsel %vm343_vm3, %v359_v12, %v321_v20  ;;  %v368_v39 = vsel %vm344_vm15, %v359_v12, %v322_v24 }
  0xd1   :  { %v369_v40 = vsel %vm345_vm13, %v359_v12, %v323_v29  ;;  %v370_v41 = vsel %vm346_vm8, %v359_v12, %v324_v30  ;;  %v371_v42 = vsel %vm347_vm9, %v359_v12, %v325_v31  ;;  %v372_v43 = vsel %vm348_vm10, %v359_v12, %v326_v32 }
  0xd2   :  { %vm1193_vm6 = vcmp.eq.s32.totalorder %v567_v19, %v960_v3  ;;  %vm1194_vm14 = vcmp.eq.s32.totalorder %v570_v21, %v960_v3  ;;  %vm1195_vm3 = vcmp.eq.s32.totalorder %v573_v22, %v960_v3  ;;  %vm1196_vm15 = vcmp.eq.s32.totalorder %v576_v23, %v960_v3 }
  0xd3   :  { %v363_v34 = vpop.permute.xlu1 %362  ;;  %vm1197_vm13 = vcmp.eq.s32.totalorder %v581_v25, %v960_v3  ;;  %vm1198_vm8 = vcmp.eq.s32.totalorder %v587_v27, %v960_v3  ;;  %vm1199_vm9 = vcmp.eq.s32.totalorder %v590_v28, %v960_v3 }
  0xd4   :  { %v373_v44 = vsel %vm1193_vm6, %v363_v34, %v327_v8  ;;  %v374_v36 = vsel %vm1194_vm14, %v363_v34, %v328_v9  ;;  %v375_v45 = vsel %vm1195_vm3, %v363_v34, %v329_v10  ;;  %v376_v46 = vsel %vm1196_vm15, %v363_v34, %v330_v11 }
  0xd5   :  { %v377_v48 = vsel %vm1197_vm13, %v363_v34, %v331_v13  ;;  %v378_v49 = vsel %vm354_vm7, %v363_v34, %v332_v14  ;;  %v379_v50 = vsel %vm1198_vm8, %v363_v34, %v333_v15  ;;  %v380_v51 = vsel %vm1199_vm9, %v363_v34, %v334_v16 }
  0xd6   :  { %vm1200_vm9 = vcmp.eq.s32.totalorder %v570_v21, %v1062_v33 }
  0xd8   :  { %v386_v47 = vpop.permute.xlu1 %385 }
  0xd9   :  { %vm395_vm10 = vcmp.eq.s32.totalorder %v567_v19, %v386_v47  ;;  %vm396_vm6 = vcmp.eq.s32.totalorder %v570_v21, %v386_v47  ;;  %vm397_vm14 = vcmp.eq.s32.totalorder %v573_v22, %v386_v47  ;;  %vm398_vm3 = vcmp.eq.s32.totalorder %v576_v23, %v386_v47 }
  0xda   :  { %vm399_vm15 = vcmp.eq.s32.totalorder %v581_v25, %v386_v47  ;;  %vm400_vm7 = vcmp.eq.s32.totalorder %v584_v26, %v386_v47  ;;  %vm401_vm13 = vcmp.eq.s32.totalorder %v587_v27, %v386_v47  ;;  %vm402_vm8 = vcmp.eq.s32.totalorder %v590_v28, %v386_v47 }
  0xdb   :  { %v419_v53 = vsel %vm395_vm10, %v409_v52, %v373_v44  ;;  %v420_v54 = vsel %vm396_vm6, %v409_v52, %v374_v36  ;;  %v421_v55 = vsel %vm397_vm14, %v409_v52, %v375_v45  ;;  %v422_v56 = vsel %vm398_vm3, %v409_v52, %v376_v46 }
  0xdc   :  { %v423_v57 = vsel %vm399_vm15, %v409_v52, %v377_v48  ;;  %v424_v58 = vsel %vm400_vm7, %v409_v52, %v378_v49  ;;  %v425_v59 = vsel %vm401_vm13, %v409_v52, %v379_v50  ;;  %v426_v60 = vsel %vm402_vm8, %v409_v52, %v380_v51  ;;  %435 = vst [vmem:[#allocation4 + $0x40] sm:$0xff] %v419_v53  ;;  %v405_v61 = vpop.permute.xlu1 %404 }
  0xdd   :  { %436 = vst [vmem:[#allocation4 + $0x48] sm:$0xff] %v420_v54  ;;  %437 = vst [vmem:[#allocation4 + $0x50] sm:$0xff] %v421_v55  ;;  %v411_v62 = vsel %vm387_vm11, %v405_v61, %v365_v35  ;;  %v412_v63 = vsel %vm1200_vm9, %v405_v61, %v366_v37  ;;  %v413_v0 = vsel %vm389_vm4, %v405_v61, %v367_v38 }
  0xde   :  { %438 = vst [vmem:[#allocation4 + $0x58] sm:$0xff] %v422_v56  ;;  %439 = vst [vmem:[#allocation4 + $0x60] sm:$0xff] %v423_v57  ;;  %v414_v1 = vsel %vm390_vm0, %v405_v61, %v368_v39  ;;  %v415_v2 = vsel %vm391_vm1, %v405_v61, %v369_v40  ;;  %v416_v19 = vsel %vm392_vm5, %v405_v61, %v370_v41 }
  0xdf   :  { %440 = vst [vmem:[#allocation4 + $0x68] sm:$0xff] %v424_v58  ;;  %441 = vst [vmem:[#allocation4 + $0x70] sm:$0xff] %v425_v59  ;;  %v417_v21 = vsel %vm393_vm2, %v405_v61, %v371_v42  ;;  %v418_v22 = vsel %vm394_vm12, %v405_v61, %v372_v43 }
  0xe0   :  { %442 = vst [vmem:[#allocation4 + $0x78] sm:$0xff] %v426_v60  ;;  %427 = vst [vmem:[#allocation4] sm:$0xff] %v411_v62 }
  0xe1   :  { %428 = vst [vmem:[#allocation4 + $0x8] sm:$0xff] %v412_v63  ;;  %429 = vst [vmem:[#allocation4 + $0x10] sm:$0xff] %v413_v0 }
  0xe2   :  { %430 = vst [vmem:[#allocation4 + $0x18] sm:$0xff] %v414_v1  ;;  %431 = vst [vmem:[#allocation4 + $0x20] sm:$0xff] %v415_v2 }
  0xe3   :  { %432 = vst [vmem:[#allocation4 + $0x28] sm:$0xff] %v416_v19  ;;  %433 = vst [vmem:[#allocation4 + $0x30] sm:$0xff] %v417_v21 }
  0xe4   :  { %434 = vst [vmem:[#allocation4 + $0x38] sm:$0xff] %v418_v22 }
  0xe5 PF:  { %s522_s1 = smov [#allocation4]  }
  0xe6   :  { %s448_s2 = sshll.u32 %s522_s1, 4  ;;  %s449_s2 = int_to_ptr.vmem [resolvable:$true] %s448_s2 }
  0xe7   :  { %s489_s23 = scalar_lea.vmem %s449_s2, 2048  ;;  %p494_p3 = scmp.lt.s32.totalorder %s449_s2, %s449_s2 }
  0xe8   :  { %p490_p2 = scmp.ne.s32.totalorder %s449_s2, %s489_s23  ;;  %p495_p4 = scmp.lt.s32.totalorder %s489_s23, %s489_s23 }
  0xea   :  { %p496_p5 = por %p495_p4, %p494_p3 }
  0xec   :  { %p497_p6 = pnand %p496_p5, %p490_p2 }
  0xee   :  { %500 = shalt.err (!%p497_p6)
}
  0xef   :  { %s501_s26 = scalar_lea.hbm %s1179_s3, 2048 }
  0xf0   :  { %p502_p7 = scmp.ne.s32.totalorder %s1179_s3, %s501_s26  ;;  %p505_p8 = scmp.lt.u32.totalorder %s501_s26, %s1179_s3 }
  0xf2   :  { %p507_p9 = pnand %p505_p8, %p502_p7 }
  0xf4   :  { %510 = shalt.err (!%p507_p9)
}
  0xf5   :  { %s523_s4 = smov 1024   ;;  %s524_s5 = smov 64  }
  0xf6   :  { %454 = dma.vmem_to_hbm [thread:$0]  %s449_s2, 2048, %s1179_s3, [#allocation5], %s523_s4, %s523_s4, %s524_s5  }
  0xf7   :  { %511 = dma.done.wait [#allocation5], 2048  }
  0xf8   :  { %512 = vsyncadd [#allocation5], 4294965248 }
  0xf9   :  { %458 = vsyncpa [#allocation5], 1 }

</bundles_post_ra>
